<compile_context>
chip_gen: v6e
topology: v6e:2x2x1
jax: 0.10.0
libtpu: 0.0.40
codegen_flags: <defaults>
</compile_context>

<pallas_src>
import jax
import jax.numpy as jnp
from jax import lax
from jax.experimental import pallas as pl
from jax.experimental.pallas import tpu as pltpu


def _round_up(v, m):
    return (v + m - 1) // m * m


def cond_linear_kernel(x_ref, y_ref, w_ref, b_ref, e_ref, o_ref):
    """x_ref: (tile_b, num_in); y_ref: (tile_b, 1) int32;
    w_ref: (num_in, num_out) = W^T; b_ref: (1, num_out);
    e_ref: (n_steps, num_out); o_ref: (tile_b, num_out)."""
    tile_b = x_ref.shape[0]
    n_steps = e_ref.shape[0]

    # Bounded in-kernel embedding "gather": one-hot(y) @ embed table on the
    # MXU (K = n_steps).  Exact for valid y; all-zero row for out-of-range y.
    steps = lax.broadcasted_iota(jnp.int32, (tile_b, n_steps), 1)
    onehot = (steps == y_ref[...]).astype(x_ref.dtype)        # (tile_b, n_steps)
    gamma = jnp.dot(onehot, e_ref[...], preferred_element_type=jnp.float32)

    # (tile_b, num_in) @ (num_in, num_out) on the MXU, f32 accumulate.
    acc = jnp.dot(x_ref[...], w_ref[...], preferred_element_type=jnp.float32)

    # f32 epilogue: bias + conditional scale, then cast to output dtype.
    o_ref[...] = (gamma * (acc + b_ref[...])).astype(o_ref.dtype)


_VMEM_BUDGET_BYTES = 32 * 1024 * 1024   # conservative across v5e / v6e / v7x


def _choose_tile_b(B, num_in, num_out, n_steps):
    """Largest batch tile (multiple of 8, <= 1024) whose double-buffered
    x/y/out blocks plus the resident W^T/bias/embed blocks fit the VMEM
    budget; force >= 2 grid steps once B > 256 so v7x megacore uses both TCs."""
    itemsize = 4  # f32 / int32
    resident = 2 * itemsize * num_out * (num_in + 1 + n_steps)  # W^T + bias + embed
    per_row = 2 * itemsize * (num_in + 1 + num_out)             # x + y + out, 2 bufs
    cap = (_VMEM_BUDGET_BYTES - resident) // max(per_row, 1)
    cap = max(8, min(1024, cap // 8 * 8))
    # TODO(synk): for layers where W^T alone exceeds the budget, also tile num_out.
    if B <= 256:
        return B if B <= cap else cap
    # >= 2 steps (megacore), bounded by the VMEM budget; multiple of 8 so a
    # ragged last tile stays a legal block.
    return min(cap, _round_up((B + 1) // 2, 8))


def prepare_params(w, b, embed_weight):
    """One-time layout prep (not in the per-step hot path): transpose the
    Linear weight to (num_in, num_out) and reshape the bias to a (1, num_out)
    row.  No lane padding — the kernel writes a full-dim (B, num_out) output
    directly, avoiding both the padded-write amplification and the wrapper
    slice copy."""
    return w.T, b.reshape(1, -1), embed_weight


@jax.jit
def conditional_linear(x, y, w_t, b_row, e):
    """x: (B, num_in) f32; y: (B,) int; w_t: (num_in, num_out) f32 (= W^T);
    b_row: (1, num_out) f32; e: (n_steps, num_out) f32.
    Returns (B, num_out) f32 = embed(y) * (x @ W^T + b)."""
    B, num_in = x.shape
    num_out = w_t.shape[1]
    n_steps = e.shape[0]
    y2 = y.astype(jnp.int32).reshape(B, 1)

    tile_b = _choose_tile_b(B, num_in, num_out, n_steps)
    grid = (pl.cdiv(B, tile_b),)   # ragged last tile: OOB stores masked by Pallas

    itemsize = 4
    vmem_est = (2 * itemsize * num_out * (num_in + 1 + n_steps)
                + 2 * itemsize * tile_b * (num_in + 1 + num_out))
    vmem_limit = int(min(48 * 1024 * 1024, max(16 * 1024 * 1024, 2 * vmem_est)))

    return pl.pallas_call(
        cond_linear_kernel,
        out_shape=jax.ShapeDtypeStruct((B, num_out), jnp.float32),
        grid=grid,
        in_specs=[
            # x and y stream along the batch grid axis.
            pl.BlockSpec((tile_b, num_in), lambda i: (i, 0)),
            pl.BlockSpec((tile_b, 1), lambda i: (i, 0)),
            # W^T, bias, embedding table: constant block index -> resident in
            # VMEM across all batch steps (no re-DMA).
            pl.BlockSpec((num_in, num_out), lambda i: (0, 0)),
            pl.BlockSpec((1, num_out), lambda i: (0, 0)),
            pl.BlockSpec((n_steps, num_out), lambda i: (0, 0)),
        ],
        # Direct (B, num_out) output: full-dim last block, no wrapper slice,
        # no lane-pad write amplification (masked vst when num_out % 128 != 0).
        out_specs=pl.BlockSpec((tile_b, num_out), lambda i: (i, 0)),
        compiler_params=pltpu.CompilerParams(
            dimension_semantics=("parallel",),   # batch axis shards across TCs
            vmem_limit_bytes=vmem_limit),
    )(x, y2, w_t, b_row, e)


def init_params(key, num_in, num_out, n_steps):
    """Deterministic init matching the PyTorch module's __init__ distributions."""
    k_w, k_b, k_e = jax.random.split(key, 3)
    bound = 1.0 / jnp.sqrt(jnp.float32(num_in))
    # nn.Linear: weight (num_out, num_in), bias (num_out,), both U(-bound, bound)
    w = jax.random.uniform(k_w, (num_out, num_in), jnp.float32, -bound, bound)
    b = jax.random.uniform(k_b, (num_out,), jnp.float32, -bound, bound)
    # nn.Embedding(n_steps, num_out) with .weight.data.uniform_() -> U(0, 1)
    embed_weight = jax.random.uniform(k_e, (n_steps, num_out), jnp.float32, 0.0, 1.0)
    return w, b, embed_weight


if __name__ == "__main__":
    key = jax.random.PRNGKey(0)
    B, num_in, num_out, n_steps = 8, 32, 64, 10

    k_p, k_x, k_y = jax.random.split(key, 3)
    w, b, embed_weight = init_params(k_p, num_in, num_out, n_steps)
    x = jax.random.normal(k_x, (B, num_in), jnp.float32)
    y = jax.random.randint(k_y, (B,), 0, n_steps, jnp.int32)

    # One-time parameter layout prep (transpose + bias row).
    w_t, b_row, e = prepare_params(w, b, embed_weight)

    out = conditional_linear(x, y, w_t, b_row, e)
    out = jax.block_until_ready(out)

    # Pure-JAX reference.
    ref = embed_weight[y] * (x @ w.T + b)
    assert out.shape == ref.shape, f"shape mismatch {out.shape} vs {ref.shape}"
    assert jnp.allclose(out, ref, atol=1e-5, rtol=1e-5), "mismatch vs reference"

    print("KERNEL_OK")
</pallas_src>

<mosaic_0001>
module attributes {stable_mosaic.version = 11 : i64} {
  func.func @cond_linear_kernel(%arg0: i32, %arg1: memref<8x32xf32, #tpu.memory_space<vmem>>, %arg2: memref<8x1xi32, #tpu.memory_space<vmem>>, %arg3: memref<32x64xf32, #tpu.memory_space<vmem>>, %arg4: memref<1x64xf32, #tpu.memory_space<vmem>>, %arg5: memref<10x64xf32, #tpu.memory_space<vmem>>, %arg6: memref<8x64xf32, #tpu.memory_space<vmem>>) attributes {dimension_semantics = [#tpu.dimension_semantics<parallel>], iteration_bounds = array<i64: 1>, scalar_prefetch = 0 : i64, scratch_operands = 0 : i64, tpu.core_type = #tpu.core_type<tc>, window_params = [{transform_indices = @transform_0, window_bounds = array<i64: 8, 32>}, {transform_indices = @transform_1, window_bounds = array<i64: 8, 1>}, {pipeline_mode = #tpu.pipeline_mode<synchronous>, transform_indices = @transform_2, window_bounds = array<i64: 32, 64>}, {pipeline_mode = #tpu.pipeline_mode<synchronous>, transform_indices = @transform_3, window_bounds = array<i64: 1, 64>}, {pipeline_mode = #tpu.pipeline_mode<synchronous>, transform_indices = @transform_4, window_bounds = array<i64: 10, 64>}, {transform_indices = @transform_5, window_bounds = array<i64: 8, 64>}]} {
    %0 = tpu.iota {dimensions = array<i32: 1>} : vector<8x10xi32>
    %c0 = arith.constant 0 : index
    %c0_0 = arith.constant 0 : index
    %1 = vector.load %arg2[%c0, %c0_0] : memref<8x1xi32, #tpu.memory_space<vmem>>, vector<8x1xi32>
    %2 = vector.broadcast %1 : vector<8x1xi32> to vector<8x10xi32>
    %3 = arith.cmpi eq, %0, %2 : vector<8x10xi32>
    %4 = arith.extui %3 : vector<8x10xi1> to vector<8x10xi32>
    %5 = arith.sitofp %4 : vector<8x10xi32> to vector<8x10xf32>
    %c0_1 = arith.constant 0 : index
    %c0_2 = arith.constant 0 : index
    %6 = vector.load %arg5[%c0_1, %c0_2] : memref<10x64xf32, #tpu.memory_space<vmem>>, vector<10x64xf32>
    %cst = arith.constant dense<0.000000e+00> : vector<8x64xf32>
    %7 = tpu.matmul %5, %6, %cst {dimension_numbers = #tpu.dot_dimension_numbers<[1], [0], [0], [1], [0, 0, 1, 1], [], []>} : vector<8x10xf32>, vector<10x64xf32>, vector<8x64xf32> -> vector<8x64xf32>
    %c0_3 = arith.constant 0 : index
    %c0_4 = arith.constant 0 : index
    %8 = vector.load %arg1[%c0_3, %c0_4] : memref<8x32xf32, #tpu.memory_space<vmem>>, vector<8x32xf32>
    %c0_5 = arith.constant 0 : index
    %c0_6 = arith.constant 0 : index
    %9 = vector.load %arg3[%c0_5, %c0_6] : memref<32x64xf32, #tpu.memory_space<vmem>>, vector<32x64xf32>
    %cst_7 = arith.constant dense<0.000000e+00> : vector<8x64xf32>
    %10 = tpu.matmul %8, %9, %cst_7 {dimension_numbers = #tpu.dot_dimension_numbers<[1], [0], [0], [1], [0, 0, 1, 1], [], []>} : vector<8x32xf32>, vector<32x64xf32>, vector<8x64xf32> -> vector<8x64xf32>
    %c0_8 = arith.constant 0 : index
    %c0_9 = arith.constant 0 : index
    %11 = vector.load %arg4[%c0_8, %c0_9] : memref<1x64xf32, #tpu.memory_space<vmem>>, vector<1x64xf32>
    %12 = vector.broadcast %11 : vector<1x64xf32> to vector<8x64xf32>
    %13 = arith.addf %10, %12 : vector<8x64xf32>
    %14 = arith.mulf %7, %13 : vector<8x64xf32>
    %c0_10 = arith.constant 0 : index
    %c0_11 = arith.constant 0 : index
    %15 = vector.load %arg6[%c0_10, %c0_11] : memref<8x64xf32, #tpu.memory_space<vmem>>, vector<8x64xf32>
    tpu.vector_store %arg6[%c0_10, %c0_11], %14 {strides = array<i32>} : memref<8x64xf32, #tpu.memory_space<vmem>>, vector<8x64xf32>,
    return
  }
  func.func @transform_0(%arg0: i32) -> (i32, i32) {
    %c0_i32 = arith.constant 0 : i32
    %c0_i32_0 = arith.constant 0 : i32
    return %arg0, %c0_i32 : i32, i32
  }
  func.func @transform_1(%arg0: i32) -> (i32, i32) {
    %c0_i32 = arith.constant 0 : i32
    %c0_i32_0 = arith.constant 0 : i32
    return %arg0, %c0_i32 : i32, i32
  }
  func.func @transform_2(%arg0: i32) -> (i32, i32) {
    %c0_i32 = arith.constant 0 : i32
    %c0_i32_0 = arith.constant 0 : i32
    %c0_i32_1 = arith.constant 0 : i32
    return %c0_i32, %c0_i32_0 : i32, i32
  }
  func.func @transform_3(%arg0: i32) -> (i32, i32) {
    %c0_i32 = arith.constant 0 : i32
    %c0_i32_0 = arith.constant 0 : i32
    %c0_i32_1 = arith.constant 0 : i32
    return %c0_i32, %c0_i32_0 : i32, i32
  }
  func.func @transform_4(%arg0: i32) -> (i32, i32) {
    %c0_i32 = arith.constant 0 : i32
    %c0_i32_0 = arith.constant 0 : i32
    %c0_i32_1 = arith.constant 0 : i32
    return %c0_i32, %c0_i32_0 : i32, i32
  }
  func.func @transform_5(%arg0: i32) -> (i32, i32) {
    %c0_i32 = arith.constant 0 : i32
    %c0_i32_0 = arith.constant 0 : i32
    return %arg0, %c0_i32 : i32, i32
  }
}

</mosaic_0001>

<bundles_post_ra>
// kernel: conditional_linear.1
= control target key start
LH: loop header
LB: loop body
LE: loop exit
PB: predicated region body
PF: predicated region fallthrough
CT: control target
= control target key end

     0   :  { %10 = vsyncpa [#allocation3], 0  ;;  %s406_s0 = inlined_call_operand.hbm [shape: f32[8,32], index: 0, kind: input, shape index: {}]   ;;  %s407_s1 = inlined_call_operand.vmem [shape: s32[8,1], index: 1, kind: input, shape index: {}]   ;;  %s408_s2 = inlined_call_operand.hbm [shape: f32[32,64], index: 2, kind: input, shape index: {}]   ;;  %s409_s3 = inlined_call_operand.vmem [shape: f32[1,64], index: 3, kind: input, shape index: {}]   ;;  %s410_s4 = inlined_call_operand.vmem [shape: f32[10,64], index: 4, kind: input, shape index: {}]   ;;  %s411_s5 = inlined_call_operand.hbm [shape: f32[8,64], index: 5, kind: output, shape index: {}]  }
   0x1   :  { %11 = vsyncpa [#allocation6], 0 }
   0x2   :  { %12 = vsyncpa [#allocation4], 0  ;;  %s347_s18 = smov [#allocation2]   ;;  %s348_s20 = smov [#allocation5]  }
   0x3   :  { %s19_s19 = sshll.u32 %s347_s18, 4  ;;  %s30_s21 = sshll.u32 %s348_s20, 4  ;;  %s20_s19 = int_to_ptr.vmem [resolvable:$true] %s19_s19  ;;  %s31_s21 = int_to_ptr.vmem [resolvable:$true] %s30_s21 }
   0x4   :  { %s289_s22 = scalar_lea.vmem %s20_s19, 128  ;;  %p294_p1 = scmp.lt.s32.totalorder %s20_s19, %s20_s19 }
   0x5   :  { %p290_p0 = scmp.ne.s32.totalorder %s20_s19, %s289_s22  ;;  %p295_p2 = scmp.lt.s32.totalorder %s289_s22, %s289_s22 }
   0x7   :  { %p296_p3 = por %p295_p2, %p294_p1 }
   0x9   :  { %p297_p4 = pnand %p296_p3, %p290_p0 }
   0xb   :  { %300 = shalt.err (!%p297_p4)
}
   0xc   :  { %22 = dma.hbm_to_vmem [thread:$0]  %s406_s0, 128, %s20_s19, [#allocation3]  }
   0xd   :  { %s309_s25 = scalar_lea.vmem %s31_s21, 512  ;;  %p314_p6 = scmp.lt.s32.totalorder %s31_s21, %s31_s21 }
   0xe   :  { %p310_p5 = scmp.ne.s32.totalorder %s31_s21, %s309_s25  ;;  %p315_p7 = scmp.lt.s32.totalorder %s309_s25, %s309_s25 }
  0x10   :  { %p316_p8 = por %p315_p7, %p314_p6 }
  0x12   :  { %p317_p9 = pnand %p316_p8, %p310_p5 }
  0x14   :  { %320 = shalt.err (!%p317_p9)
}
  0x15   :  { %s349_s26 = smov 128   ;;  %s350_s27 = smov 8  }
  0x16   :  { %36 = dma.hbm_to_vmem [thread:$0]  %s408_s2, 512, %s31_s21, [#allocation6], %s349_s26, %s349_s26, %s350_s27  }
  0x17   :  { %341 = dma.done.wait [#allocation3], 128  }
  0x18   :  { %342 = vsyncadd [#allocation3], 4294967168 }
  0x19   :  { %343 = dma.done.wait [#allocation6], 512  }
  0x1a   :  { %344 = vsyncadd [#allocation6], 4294966784  ;;  %v351_v0 = vmov 0   ;;  %v352_v1 = vmov 0.0   ;;  %vm353_vm0 = vmmov 0   ;;  %v49_v2 = vld [vmem:[%s407_s1] sm:$0xff]  ;;  %v47_v10 = vlaneseq }
  0x1b   :  { %280 = vset.pattern.permute.xlu0 %v351_v0  ;;  %261 = vmatprep.subr.mxu1 %v352_v1  ;;  %v140_v3 = vld [vmem:[#allocation5 + $0x18] sm:$0xff]  ;;  %v139_v4 = vld [vmem:[#allocation5 + $0x10] sm:$0xff]  ;;  %vm62_vm1 = vcmask 1041408   ;;  %v138_v5 = vld [vmem:[#allocation5 + $0x8] sm:$0xff]  ;;  %vm148_vm2 = vcmask 261120   ;;  %vm58_vm3 = vcmask 80896  }
  0x1c   :  { %269 = vmatprep.mubr.msk.f32.mxu1 %vm353_vm0, %v352_v1  ;;  %254 = vmatprep.subr.mxu0 %v352_v1  ;;  %v57_v6 = vld [vmem:[%s410_s4 + $0x8] sm:$0x3]  ;;  %v56_v7 = vld [vmem:[%s410_s4] sm:$0xff]  ;;  %v48_v11 = vand.u32 127, %v47_v10  ;;  %s354_s9 = smov [#allocation7]   ;;  %vm223_vm5 = vcmask 523264  }
  0x1d   :  { %258 = vmatprep.mubr.msk.f32.mxu0 %vm353_vm0, %v352_v1  ;;  %51 = vperm.xlu0 %280, %v49_v2   ;;  %v137_v8 = vld [vmem:[#allocation5] sm:$0xff]  ;;  %v136_v9 = vld [vmem:[#allocation2] sm:$0xff]  ;;  %s231_s10 = sshll.u32 %s354_s9, 4  ;;  %s232_s10 = int_to_ptr.vmem [resolvable:$true] %s231_s10 }
  0x1e   :  { %262 = vmatpush3.msra.mxu1 %v140_v3  ;;  %255 = vmatpush3.msk.msra.mxu0 %vm62_vm1, %v57_v6  ;;  %v244_v16 = vld [vmem:[%s409_s3] ss:$0 sm:$0xff]  ;;  %s321_s11 = scalar_lea.vmem %s232_s10, 128  ;;  %p326_p11 = scmp.lt.s32.totalorder %s232_s10, %s232_s10 }
  0x1f   :  { %263 = vmatprep.subr.mxu1 %v352_v1  ;;  %256 = vmatprep.subr.mxu0 %v352_v1  ;;  %p322_p10 = scmp.ne.s32.totalorder %s232_s10, %s321_s11  ;;  %p327_p12 = scmp.lt.s32.totalorder %s321_s11, %s321_s11 }
  0x20   :  { %264 = vmatpush3.msra.mxu1 %v139_v4  ;;  %257 = vmatpush3.msra.mxu0 %v56_v7 }
  0x21   :  { %265 = vmatprep.subr.mxu1 %v352_v1  ;;  %p328_p13 = por %p327_p12, %p326_p11 }
  0x22   :  { %266 = vmatpush3.msra.mxu1 %v138_v5 }
  0x23   :  { %267 = vmatprep.subr.mxu1 %v352_v1  ;;  %p329_p0 = pnand %p328_p13, %p322_p10 }
  0x24   :  { %268 = vmatpush3.msra.mxu1 %v137_v8 }
  0x25   :  { %270 = vmatmul.mubr.msk.f32.vlgmr.msra.gmra.mxu1 %vm148_vm2, %v136_v9 }
  0x98   :  { %v52_v12 = vpop.permute.xlu0 %51 }
  0x99   :  { %vm53_vm4 = vcmp.eq.s32.totalorder %v48_v11, %v52_v12 }
  0x9a   :  { %v241_v13 = vsel %vm53_vm4, 1.0, %v352_v1 }
  0x9b   :  { %259 = vmatmul.mubr.msk.f32.vlgmr.msra.gmra.mxu0 %vm58_vm3, %v241_v13 }
  0xe5   :  { %v218_v14 = vpop.f32.mrf.mxu1 }
  0xe6   :  { %v219_v17 = vadd.f32 %v244_v16, %v218_v14 }
  0xe7   :  { %v271_v15 = vpop.f32.mrf.mxu1 }
 0x15b   :  { %v132_v18 = vpop.f32.mrf.mxu0 }
 0x15c   :  { %v222_v19 = vmul.f32 %v219_v17, %v132_v18 }
 0x15d   :  { %v260_v20 = vpop.f32.mrf.mxu0 }
 0x15e   :  { %224 = vst.msk [vmem:[#allocation7] sm:$0xff] %vm223_vm5, %v222_v19 }
 0x15f   :  { %332 = shalt.err (!%p329_p0)
}
 0x160   :  { %234 = dma.vmem_to_hbm [thread:$0]  %s232_s10, 128, %s411_s5, [#allocation4]  }
 0x161   :  { %345 = dma.done.wait [#allocation4], 128  }
 0x162   :  { %346 = vsyncadd [#allocation4], 4294967168 }
 0x163   :  { %238 = vsyncpa [#allocation3], 1 }
 0x164   :  { %239 = vsyncpa [#allocation6], 1 }
 0x165   :  { %240 = vsyncpa [#allocation4], 1 }

</bundles_post_ra>
